<compile_context>
chip_gen: v5e
topology: v5e:2x2
jax: 0.10.0
libtpu: 0.0.40
codegen_flags: <defaults>
</compile_context>

<pallas_src>
import jax
import jax.numpy as jnp
from jax.experimental import pallas as pl
from jax.experimental.pallas import tpu as pltpu

_NEG = -1e30  # bias fill for padded output lanes -> exp() underflows to 0


def _round_up(n, m):
    return ((n + m - 1) // m) * m


def _pad2(a, rows, cols, fill=0.0):
    r, c = a.shape
    return jnp.pad(a, ((0, rows - r), (0, cols - c)), constant_values=fill)


def mlp_kernel(x_ref, w1_ref, b1_ref, w2_ref, b2_ref, w3_ref, b3_ref, o_ref):
    # Layer 1: Linear (bf16 operands, f32 MXU accumulation) + bias + ReLU (f32)
    h1 = jnp.dot(x_ref[...], w1_ref[...], preferred_element_type=jnp.float32)
    h1 = jnp.maximum(h1 + b1_ref[...], 0.0)
    # Layer 2: Linear + ReLU
    h2 = jnp.dot(h1.astype(jnp.bfloat16), w2_ref[...],
                 preferred_element_type=jnp.float32)
    h2 = jnp.maximum(h2 + b2_ref[...], 0.0)
    # Layer 3: Linear (padded output lanes get -1e30 from the padded bias)
    logits = jnp.dot(h2.astype(jnp.bfloat16), w3_ref[...],
                     preferred_element_type=jnp.float32)
    logits = logits + b3_ref[...]
    # Softmax over dim=1 (features), numerically stabilized.
    m = jnp.max(logits, axis=1, keepdims=True)
    e = jnp.exp(logits - m)
    denom = jnp.sum(e, axis=1, keepdims=True)
    o_ref[...] = (e * pl.reciprocal(denom, approx=True)).astype(o_ref.dtype)


def activation_net_forward(x, params, *, block_b=512):
    """Fused MLP+softmax forward.

    x: (B, in_dim) float32
    params: dict with w1 (in,h1), b1 (1,h1), w2 (h1,h2), b2 (1,h2),
            w3 (h2,out), b3 (1,out), all float32
    returns: (B, out) float32 softmax probabilities
    """
    w1, b1 = params["w1"], params["b1"]
    w2, b2 = params["w2"], params["b2"]
    w3, b3 = params["w3"], params["b3"]
    B, in_dim = x.shape
    h1_dim, h2_dim, out_dim = w1.shape[1], w2.shape[1], w3.shape[1]

    # Lane-dense (multiple-of-128) feature dims; batch tile multiple of 8.
    din_p = _round_up(in_dim, 128)
    h1_p = _round_up(h1_dim, 128)
    h2_p = _round_up(h2_dim, 128)
    dout_p = _round_up(out_dim, 128)

    tb = min(block_b, _round_up(B, 8))        # batch tile (multiple of 8)
    b_p = _round_up(B, tb)                    # padded batch

    # Pad (zeros everywhere except b3's padded lanes -> -1e30 so softmax
    # over the full 128-lane slab equals softmax over the real out_dim lanes).
    # Cast x and weights to bf16: halves HBM traffic for the batch-scaling
    # tensor and feeds the MXU natively; biases / elementwise math stay f32.
    xp = _pad2(x, b_p, din_p).astype(jnp.bfloat16)
    w1p = _pad2(w1, din_p, h1_p).astype(jnp.bfloat16)
    b1p = _pad2(b1, 1, h1_p)
    w2p = _pad2(w2, h1_p, h2_p).astype(jnp.bfloat16)
    b2p = _pad2(b2, 1, h2_p)
    w3p = _pad2(w3, h2_p, dout_p).astype(jnp.bfloat16)
    b3p = _pad2(b3, 1, dout_p, fill=_NEG)

    grid = (b_p // tb,)

    out_padded = pl.pallas_call(
        mlp_kernel,
        out_shape=jax.ShapeDtypeStruct((b_p, dout_p), jnp.float32),
        grid=grid,
        in_specs=[
            # x: tiled along the batch grid axis (auto double-buffered DMA)
            pl.BlockSpec((tb, din_p), lambda i: (i, 0)),
            # weights/biases: constant index_map -> fetched once, VMEM-resident
            pl.BlockSpec((din_p, h1_p), lambda i: (0, 0)),
            pl.BlockSpec((1, h1_p), lambda i: (0, 0)),
            pl.BlockSpec((h1_p, h2_p), lambda i: (0, 0)),
            pl.BlockSpec((1, h2_p), lambda i: (0, 0)),
            pl.BlockSpec((h2_p, dout_p), lambda i: (0, 0)),
            pl.BlockSpec((1, dout_p), lambda i: (0, 0)),
        ],
        out_specs=pl.BlockSpec((tb, dout_p), lambda i: (i, 0)),
        compiler_params=pltpu.CompilerParams(
            dimension_semantics=("parallel",),   # megacore sharding on v7x
            # tiles are tiny (<1 MiB/step); 32 MiB fits every generation's
            # scoped VMEM default (v7x: 32/64 MiB; v5e/v6e: 16-32/128 MiB)
            vmem_limit_bytes=32 << 20,
        ),
    )(xp, w1p, b1p, w2p, b2p, w3p, b3p)

    # Slice off batch + output-lane padding.
    return out_padded[:B, :out_dim]


def init_params(key, in_dim, n_hidden_1, n_hidden_2, out_dim):
    """Deterministic synthetic parameter init (PyTorch-Linear-like uniform)."""
    ks = jax.random.split(key, 6)

    def linear(kw, kb, fan_in, fan_out):
        bound = 1.0 / jnp.sqrt(fan_in)
        w = jax.random.uniform(kw, (fan_in, fan_out), jnp.float32, -bound, bound)
        b = jax.random.uniform(kb, (1, fan_out), jnp.float32, -bound, bound)
        return w, b

    w1, b1 = linear(ks[0], ks[1], in_dim, n_hidden_1)
    w2, b2 = linear(ks[2], ks[3], n_hidden_1, n_hidden_2)
    w3, b3 = linear(ks[4], ks[5], n_hidden_2, out_dim)
    return {"w1": w1, "b1": b1, "w2": w2, "b2": b2, "w3": w3, "b3": b3}


def reference_forward(x, p):
    h1 = jnp.maximum(x @ p["w1"] + p["b1"], 0.0)
    h2 = jnp.maximum(h1 @ p["w2"] + p["b2"], 0.0)
    logits = h2 @ p["w3"] + p["b3"]
    return jax.nn.softmax(logits, axis=1)


if __name__ == "__main__":
    key = jax.random.PRNGKey(0)
    k_x, k_p, k_x2 = jax.random.split(key, 3)

    in_dim, n_hidden_1, n_hidden_2, out_dim = 32, 64, 64, 16
    params = init_params(k_p, in_dim, n_hidden_1, n_hidden_2, out_dim)

    # Small case (module-scale shapes).
    B = 8
    x = jax.random.normal(k_x, (B, in_dim), dtype=jnp.float32)
    out = jax.block_until_ready(activation_net_forward(x, params))
    ref = reference_forward(x, params)
    assert out.shape == (B, out_dim)
    # bf16 matmul operands + approx reciprocal => compare with loosened tol.
    assert jnp.allclose(out, ref, atol=2e-2, rtol=0), "mismatch vs JAX ref (small)"
    assert jnp.allclose(jnp.sum(out, axis=1), 1.0, atol=1e-2)

    # Multi-grid-step case: exercises batch tiling, padding, parallel grid.
    B2 = 200
    x2 = jax.random.normal(k_x2, (B2, in_dim), dtype=jnp.float32)
    out2 = jax.block_until_ready(activation_net_forward(x2, params, block_b=64))
    ref2 = reference_forward(x2, params)
    assert out2.shape == (B2, out_dim)
    assert jnp.allclose(out2, ref2, atol=2e-2, rtol=0), "mismatch vs JAX ref (tiled)"
    assert jnp.allclose(jnp.sum(out2, axis=1), 1.0, atol=1e-2)

    print("KERNEL_OK")
</pallas_src>

<mosaic_0001>
module attributes {stable_mosaic.version = 11 : i64} {
  func.func @mlp_kernel(%arg0: i32, %arg1: memref<8x128xbf16, #tpu.memory_space<vmem>>, %arg2: memref<128x128xbf16, #tpu.memory_space<vmem>>, %arg3: memref<1x128xf32, #tpu.memory_space<vmem>>, %arg4: memref<128x128xbf16, #tpu.memory_space<vmem>>, %arg5: memref<1x128xf32, #tpu.memory_space<vmem>>, %arg6: memref<128x128xbf16, #tpu.memory_space<vmem>>, %arg7: memref<1x128xf32, #tpu.memory_space<vmem>>, %arg8: memref<8x128xf32, #tpu.memory_space<vmem>>) attributes {dimension_semantics = [#tpu.dimension_semantics<parallel>], iteration_bounds = array<i64: 1>, scalar_prefetch = 0 : i64, scratch_operands = 0 : i64, tpu.core_type = #tpu.core_type<tc>, window_params = [{transform_indices = @transform_0, window_bounds = array<i64: 8, 128>}, {pipeline_mode = #tpu.pipeline_mode<synchronous>, transform_indices = @transform_1, window_bounds = array<i64: 128, 128>}, {pipeline_mode = #tpu.pipeline_mode<synchronous>, transform_indices = @transform_2, window_bounds = array<i64: 1, 128>}, {pipeline_mode = #tpu.pipeline_mode<synchronous>, transform_indices = @transform_3, window_bounds = array<i64: 128, 128>}, {pipeline_mode = #tpu.pipeline_mode<synchronous>, transform_indices = @transform_4, window_bounds = array<i64: 1, 128>}, {pipeline_mode = #tpu.pipeline_mode<synchronous>, transform_indices = @transform_5, window_bounds = array<i64: 128, 128>}, {pipeline_mode = #tpu.pipeline_mode<synchronous>, transform_indices = @transform_6, window_bounds = array<i64: 1, 128>}, {transform_indices = @transform_7, window_bounds = array<i64: 8, 128>}]} {
    %c0 = arith.constant 0 : index
    %c0_0 = arith.constant 0 : index
    %0 = vector.load %arg1[%c0, %c0_0] : memref<8x128xbf16, #tpu.memory_space<vmem>>, vector<8x128xbf16>
    %c0_1 = arith.constant 0 : index
    %c0_2 = arith.constant 0 : index
    %1 = vector.load %arg2[%c0_1, %c0_2] : memref<128x128xbf16, #tpu.memory_space<vmem>>, vector<128x128xbf16>
    %cst = arith.constant dense<0.000000e+00> : vector<8x128xf32>
    %2 = tpu.matmul %0, %1, %cst {dimension_numbers = #tpu.dot_dimension_numbers<[1], [0], [0], [1], [0, 0, 1, 1], [], []>} : vector<8x128xbf16>, vector<128x128xbf16>, vector<8x128xf32> -> vector<8x128xf32>
    %c0_3 = arith.constant 0 : index
    %c0_4 = arith.constant 0 : index
    %3 = vector.load %arg3[%c0_3, %c0_4] : memref<1x128xf32, #tpu.memory_space<vmem>>, vector<1x128xf32>
    %4 = vector.broadcast %3 : vector<1x128xf32> to vector<8x128xf32>
    %5 = arith.addf %2, %4 : vector<8x128xf32>
    %cst_5 = arith.constant 0.000000e+00 : f32
    %6 = vector.broadcast %cst_5 : f32 to vector<8x128xf32>
    %7 = arith.maximumf %5, %6 : vector<8x128xf32>
    %8 = arith.truncf %7 : vector<8x128xf32> to vector<8x128xbf16>
    %c0_6 = arith.constant 0 : index
    %c0_7 = arith.constant 0 : index
    %9 = vector.load %arg4[%c0_6, %c0_7] : memref<128x128xbf16, #tpu.memory_space<vmem>>, vector<128x128xbf16>
    %cst_8 = arith.constant dense<0.000000e+00> : vector<8x128xf32>
    %10 = tpu.matmul %8, %9, %cst_8 {dimension_numbers = #tpu.dot_dimension_numbers<[1], [0], [0], [1], [0, 0, 1, 1], [], []>} : vector<8x128xbf16>, vector<128x128xbf16>, vector<8x128xf32> -> vector<8x128xf32>
    %c0_9 = arith.constant 0 : index
    %c0_10 = arith.constant 0 : index
    %11 = vector.load %arg5[%c0_9, %c0_10] : memref<1x128xf32, #tpu.memory_space<vmem>>, vector<1x128xf32>
    %12 = vector.broadcast %11 : vector<1x128xf32> to vector<8x128xf32>
    %13 = arith.addf %10, %12 : vector<8x128xf32>
    %cst_11 = arith.constant 0.000000e+00 : f32
    %14 = vector.broadcast %cst_11 : f32 to vector<8x128xf32>
    %15 = arith.maximumf %13, %14 : vector<8x128xf32>
    %16 = arith.truncf %15 : vector<8x128xf32> to vector<8x128xbf16>
    %c0_12 = arith.constant 0 : index
    %c0_13 = arith.constant 0 : index
    %17 = vector.load %arg6[%c0_12, %c0_13] : memref<128x128xbf16, #tpu.memory_space<vmem>>, vector<128x128xbf16>
    %cst_14 = arith.constant dense<0.000000e+00> : vector<8x128xf32>
    %18 = tpu.matmul %16, %17, %cst_14 {dimension_numbers = #tpu.dot_dimension_numbers<[1], [0], [0], [1], [0, 0, 1, 1], [], []>} : vector<8x128xbf16>, vector<128x128xbf16>, vector<8x128xf32> -> vector<8x128xf32>
    %c0_15 = arith.constant 0 : index
    %c0_16 = arith.constant 0 : index
    %19 = vector.load %arg7[%c0_15, %c0_16] : memref<1x128xf32, #tpu.memory_space<vmem>>, vector<1x128xf32>
    %20 = vector.broadcast %19 : vector<1x128xf32> to vector<8x128xf32>
    %21 = arith.addf %18, %20 : vector<8x128xf32>
    %cst_17 = arith.constant dense<0xFF800000> : vector<8xf32>
    %22 = vector.multi_reduction <maximumf>, %21, %cst_17 [1] : vector<8x128xf32> to vector<8xf32>
    %23 = vector.shape_cast %22 : vector<8xf32> to vector<8x1xf32>
    %24 = vector.broadcast %23 : vector<8x1xf32> to vector<8x128xf32>
    %25 = arith.subf %21, %24 : vector<8x128xf32>
    %26 = math.exp %25 : vector<8x128xf32>
    %cst_18 = arith.constant dense<0.000000e+00> : vector<8xf32>
    %27 = vector.multi_reduction <add>, %26, %cst_18 [1] : vector<8x128xf32> to vector<8xf32>
    %28 = vector.shape_cast %27 : vector<8xf32> to vector<8x1xf32>
    %29 = tpu.reciprocal %28 {approx = true} : vector<8x1xf32> -> vector<8x1xf32>
    %30 = vector.broadcast %29 : vector<8x1xf32> to vector<8x128xf32>
    %31 = arith.mulf %26, %30 : vector<8x128xf32>
    %c0_19 = arith.constant 0 : index
    %c0_20 = arith.constant 0 : index
    %32 = vector.load %arg8[%c0_19, %c0_20] : memref<8x128xf32, #tpu.memory_space<vmem>>, vector<8x128xf32>
    tpu.vector_store %arg8[%c0_19, %c0_20], %31 {strides = array<i32>} : memref<8x128xf32, #tpu.memory_space<vmem>>, vector<8x128xf32>,
    return
  }
  func.func @transform_0(%arg0: i32) -> (i32, i32) {
    %c0_i32 = arith.constant 0 : i32
    %c0_i32_0 = arith.constant 0 : i32
    return %arg0, %c0_i32 : i32, i32
  }
  func.func @transform_1(%arg0: i32) -> (i32, i32) {
    %c0_i32 = arith.constant 0 : i32
    %c0_i32_0 = arith.constant 0 : i32
    %c0_i32_1 = arith.constant 0 : i32
    return %c0_i32, %c0_i32_0 : i32, i32
  }
  func.func @transform_2(%arg0: i32) -> (i32, i32) {
    %c0_i32 = arith.constant 0 : i32
    %c0_i32_0 = arith.constant 0 : i32
    %c0_i32_1 = arith.constant 0 : i32
    return %c0_i32, %c0_i32_0 : i32, i32
  }
  func.func @transform_3(%arg0: i32) -> (i32, i32) {
    %c0_i32 = arith.constant 0 : i32
    %c0_i32_0 = arith.constant 0 : i32
    %c0_i32_1 = arith.constant 0 : i32
    return %c0_i32, %c0_i32_0 : i32, i32
  }
  func.func @transform_4(%arg0: i32) -> (i32, i32) {
    %c0_i32 = arith.constant 0 : i32
    %c0_i32_0 = arith.constant 0 : i32
    %c0_i32_1 = arith.constant 0 : i32
    return %c0_i32, %c0_i32_0 : i32, i32
  }
  func.func @transform_5(%arg0: i32) -> (i32, i32) {
    %c0_i32 = arith.constant 0 : i32
    %c0_i32_0 = arith.constant 0 : i32
    %c0_i32_1 = arith.constant 0 : i32
    return %c0_i32, %c0_i32_0 : i32, i32
  }
  func.func @transform_6(%arg0: i32) -> (i32, i32) {
    %c0_i32 = arith.constant 0 : i32
    %c0_i32_0 = arith.constant 0 : i32
    %c0_i32_1 = arith.constant 0 : i32
    return %c0_i32, %c0_i32_0 : i32, i32
  }
  func.func @transform_7(%arg0: i32) -> (i32, i32) {
    %c0_i32 = arith.constant 0 : i32
    %c0_i32_0 = arith.constant 0 : i32
    return %arg0, %c0_i32 : i32, i32
  }
}

</mosaic_0001>

<bundles_post_ra>
// kernel: tpu_custom_call.1
= control target key start
LH: loop header
LB: loop body
LE: loop exit
PB: predicated region body
PF: predicated region fallthrough
CT: control target
= control target key end

     0   :  { %12 = vsyncpa [#allocation3], 0  ;;  %s698_s0 = inlined_call_operand.hbm [shape: bf16[8,128], index: 0, kind: input, shape index: {}]   ;;  %s699_s1 = inlined_call_operand.hbm [shape: bf16[128,128], index: 1, kind: input, shape index: {}]   ;;  %s700_s2 = inlined_call_operand.vmem [shape: f32[1,128], index: 2, kind: input, shape index: {}]   ;;  %s701_s3 = inlined_call_operand.hbm [shape: bf16[128,128], index: 3, kind: input, shape index: {}]   ;;  %s702_s4 = inlined_call_operand.vmem [shape: f32[1,128], index: 4, kind: input, shape index: {}]   ;;  %s703_s5 = inlined_call_operand.hbm [shape: bf16[128,128], index: 5, kind: input, shape index: {}]   ;;  %s704_s6 = inlined_call_operand.vmem [shape: f32[1,128], index: 6, kind: input, shape index: {}]   ;;  %s705_s7 = inlined_call_operand.hbm [shape: f32[8,128], index: 7, kind: output, shape index: {}]  }
   0x1   :  { %13 = vsyncpa [#allocation6], 0 }
   0x2   :  { %14 = vsyncpa [#allocation9], 0  ;;  %s31_s26 = sshll.u32 %s699_s1, 4  ;;  %s32_s26 = int_to_ptr.hbm [resolvable:$true] %s31_s26 }
   0x3   :  { %15 = vsyncpa [#allocation4], 0  ;;  %s627_s27 = smov [#allocation5]   ;;  %s21_s8 = sshll.u32 %s698_s0, 4  ;;  %s22_s8 = int_to_ptr.hbm [resolvable:$true] %s21_s8 }
   0x4   :  { %s33_s28 = sshll.u32 %s627_s27, 4  ;;  %s628_s9 = smov 64   ;;  %s34_s28 = int_to_ptr.vmem [resolvable:$true] %s33_s28 }
   0x5   :  { %s629_s10 = smov 4   ;;  %s630_s11 = smov [#allocation2]  }
   0x6   :  { %39 = dma.hbm_to_vmem [thread:$0]  %s32_s26, 1024, %s34_s28, [#allocation6], %s628_s9, %s628_s9, %s629_s10  }
   0x7   :  { %s23_s12 = sshll.u32 %s630_s11, 4  ;;  %s46_s15 = sshll.u32 %s701_s3, 4  ;;  %s24_s12 = int_to_ptr.vmem [resolvable:$true] %s23_s12  ;;  %s47_s15 = int_to_ptr.hbm [resolvable:$true] %s46_s15 }
   0x8   :  { %26 = dma.hbm_to_vmem [thread:$0]  %s22_s8, 64, %s24_s12, [#allocation3]  }
   0x9   :  { %s61_s17 = sshll.u32 %s703_s5, 4  ;;  %s631_s18 = smov [#allocation7]   ;;  %s62_s17 = int_to_ptr.hbm [resolvable:$true] %s61_s17 }
   0xa   :  { %s48_s19 = sshll.u32 %s631_s18, 4  ;;  %s632_s0 = smov [#allocation8]   ;;  %s49_s19 = int_to_ptr.vmem [resolvable:$true] %s48_s19 }
   0xb   :  { %54 = dma.hbm_to_vmem [thread:$0]  %s47_s15, 1024, %s49_s19, [#allocation6], %s628_s9, %s628_s9, %s629_s10  }
   0xc   :  { %s63_s20 = sshll.u32 %s632_s0, 4  ;;  %s64_s20 = int_to_ptr.vmem [resolvable:$true] %s63_s20 }
   0xd   :  { %69 = dma.hbm_to_vmem [thread:$0]  %s62_s17, 1024, %s64_s20, [#allocation9], %s628_s9, %s628_s9, %s629_s10  }
   0xe   :  { %619 = dma.done.wait [#allocation3], 64  }
   0xf   :  { %620 = vsyncadd [#allocation3], 4294967232 }
  0x10   :  { %621 = dma.done.wait [#allocation6], 2048  }
  0x11   :  { %622 = vsyncadd [#allocation6], 4294965248 }
  0x12   :  { %623 = dma.done.wait [#allocation9], 1024  }
  0x13   :  { %624 = vsyncadd [#allocation9], 4294966272  ;;  %v468_v0 = vld [vmem:[#allocation5 + $0x38] sm:$0xff]  ;;  %v467_v1 = vld [vmem:[#allocation5 + $0x30] sm:$0xff]  ;;  %s353_s27 = sshll.u32 %s705_s7, 4  ;;  %s354_s27 = int_to_ptr.hbm [resolvable:$true] %s353_s27 }
  0x14   :  { %157 = vmatpush.bf16.msra.mxu0 %v468_v0  ;;  %v476_v2 = vld [vmem:[#allocation7 + $0x38] sm:$0xff]  ;;  %v475_v3 = vld [vmem:[#allocation7 + $0x30] sm:$0xff]  ;;  %v466_v4 = vld [vmem:[#allocation5 + $0x28] sm:$0xff] }
  0x15   :  { %240 = vmatpush.bf16.msra.mxu1 %v476_v2  ;;  %v474_v5 = vld [vmem:[#allocation7 + $0x28] sm:$0xff]  ;;  %v465_v6 = vld [vmem:[#allocation5 + $0x20] sm:$0xff]  ;;  %v464_v8 = vld [vmem:[#allocation5 + $0x18] sm:$0xff] }
  0x16   :  { %v473_v7 = vld [vmem:[#allocation7 + $0x20] sm:$0xff]  ;;  %v472_v9 = vld [vmem:[#allocation7 + $0x18] sm:$0xff]  ;;  %v463_v10 = vld [vmem:[#allocation5 + $0x10] sm:$0xff] }
  0x17   :  { %v471_v11 = vld [vmem:[#allocation7 + $0x10] sm:$0xff]  ;;  %v462_v12 = vld [vmem:[#allocation5 + $0x8] sm:$0xff]  ;;  %v461_v13 = vld [vmem:[#allocation5] sm:$0xff] }
  0x18   :  { %158 = vmatpush.bf16.msra.mxu0 %v467_v1  ;;  %v88_v14 = vld [vmem:[#allocation2] sm:$0xf]  ;;  %v470_v15 = vld [vmem:[#allocation7 + $0x8] sm:$0xff]  ;;  %v469_v16 = vld [vmem:[#allocation7] sm:$0xff] }
  0x19   :  { %241 = vmatpush.bf16.msra.mxu1 %v475_v3  ;;  %v484_v17 = vld [vmem:[#allocation8 + $0x38] sm:$0xff]  ;;  %v483_v18 = vld [vmem:[#allocation8 + $0x30] sm:$0xff]  ;;  %v482_v19 = vld [vmem:[#allocation8 + $0x28] sm:$0xff] }
  0x1a   :  { %323 = vmatpush.bf16.msra.mxu2 %v484_v17  ;;  %v481_v20 = vld [vmem:[#allocation8 + $0x20] sm:$0xff]  ;;  %v480_v21 = vld [vmem:[#allocation8 + $0x18] sm:$0xff]  ;;  %v479_v22 = vld [vmem:[#allocation8 + $0x10] sm:$0xff] }
  0x1b   :  { %v492_v23 = vld [vmem:[%s700_s2] ss:$0 sm:$0xff]  ;;  %v478_v29 = vld [vmem:[#allocation8 + $0x8] sm:$0xff]  ;;  %v477_v30 = vld [vmem:[#allocation8] sm:$0xff] }
  0x1c   :  { %159 = vmatpush.bf16.msra.mxu0 %v466_v4  ;;  %v493_v31 = vld [vmem:[%s702_s4] ss:$0 sm:$0xff]  ;;  %s633_s4 = smov [#allocation10]  }
  0x1d   :  { %242 = vmatpush.bf16.msra.mxu1 %v474_v5  ;;  %v494_v37 = vld [vmem:[%s704_s6] ss:$0 sm:$0xff]  ;;  %s351_s24 = sshll.u32 %s633_s4, 4  ;;  %s352_s24 = int_to_ptr.vmem [resolvable:$true] %s351_s24 }
  0x1e   :  { %324 = vmatpush.bf16.msra.mxu2 %v483_v18 }
  0x20   :  { %160 = vmatpush.bf16.msra.mxu0 %v465_v6 }
  0x21   :  { %243 = vmatpush.bf16.msra.mxu1 %v473_v7 }
  0x22   :  { %325 = vmatpush.bf16.msra.mxu2 %v482_v19 }
  0x24   :  { %161 = vmatpush.bf16.msra.mxu0 %v464_v8 }
  0x25   :  { %244 = vmatpush.bf16.msra.mxu1 %v472_v9 }
  0x26   :  { %326 = vmatpush.bf16.msra.mxu2 %v481_v20 }
  0x28   :  { %162 = vmatpush.bf16.msra.mxu0 %v463_v10 }
  0x29   :  { %245 = vmatpush.bf16.msra.mxu1 %v471_v11 }
  0x2a   :  { %327 = vmatpush.bf16.msra.mxu2 %v480_v21 }
  0x2c   :  { %163 = vmatpush.bf16.msra.mxu0 %v462_v12 }
  0x2d   :  { %246 = vmatpush.bf16.msra.mxu1 %v470_v15 }
  0x2e   :  { %328 = vmatpush.bf16.msra.mxu2 %v479_v22 }
  0x30   :  { %164 = vmatpush.bf16.msra.mxu0 %v461_v13 }
  0x31   :  { %247 = vmatpush.bf16.msra.mxu1 %v469_v16 }
  0x32   :  { %329 = vmatpush.bf16.msra.mxu2 %v478_v29 }
  0x33   :  { %165 = vmatmul.bf16.vlgmr.msra.gmra.mxu0 %v88_v14 }
  0x36   :  { %330 = vmatpush.bf16.msra.mxu2 %v477_v30 }
  0xb0   :  { %v166_v24 = vpop.f32.mrf.mxu0 }
  0xb1   :  { %v167_v25 = vadd.f32 %v492_v23, %v166_v24 }
  0xb3   :  { %v170_v26 = vmax.f32 %v167_v25, 0.0 }
  0xb5   :  { %v171_v27 = vpack.c.bf16 %v170_v26, %v170_v26 }
  0xb7   :  { %248 = vmatmul.bf16.vlgmr.msra.gmra.mxu1 %v171_v27 }
  0xb8   :  { %v168_v28 = vpop.f32.mrf.mxu0 }
 0x134   :  { %v249_v32 = vpop.f32.mrf.mxu1 }
 0x135   :  { %v250_v33 = vadd.f32 %v493_v31, %v249_v32 }
 0x137   :  { %v253_v34 = vmax.f32 %v250_v33, 0.0 }
 0x139   :  { %v254_v35 = vpack.c.bf16 %v253_v34, %v253_v34 }
 0x13b   :  { %331 = vmatmul.bf16.vlgmr.msra.gmra.mxu2 %v254_v35 }
 0x13c   :  { %v251_v36 = vpop.f32.mrf.mxu1 }
 0x1be   :  { %v332_v38 = vpop.f32.mrf.mxu2 }
 0x1bf   :  { %v333_v39 = vadd.f32 %v494_v37, %v332_v38 }
 0x1c1   :  { %336 = vmax.xlane.f32.xlu0 %v333_v39 }
 0x1c6   :  { %v334_v40 = vpop.f32.mrf.mxu2 }
 0x234   :  { %v337_v41 = vpop.xlane.xlu0 %336 }
 0x235   :  { %v338_v42 = vsub.f32 %v333_v39, %v337_v41 }
 0x237   :  { %v339_v43 = vmul.f32 1.442695, %v338_v42 }
 0x239   :  { %495 = vpow2.f32 %v339_v43 }
 0x23f   :  { %v496_v44 = vpop.eup %495 }
 0x240   :  { %341 = vadd.xlane.f32.xlu0 %v496_v44 }
 0x2b3   :  { %v342_v45 = vpop.xlane.xlu0 %341 }
 0x2b4   :  { %497 = vrcp.f32 %v342_v45 }
 0x2ba   :  { %v498_v46 = vpop.eup %497 }
 0x2bb   :  { %v344_v47 = vmul.f32 %v498_v46, %v496_v44 }
 0x2bd   :  { %345 = vst [vmem:[#allocation10] sm:$0xff] %v344_v47 }
 0x2be   :  { %356 = dma.vmem_to_hbm [thread:$0]  %s352_s24, 128, %s354_s27, [#allocation4]  }
 0x2bf   :  { %625 = dma.done.wait [#allocation4], 128  }
 0x2c0   :  { %626 = vsyncadd [#allocation4], 4294967168 }
 0x2c1   :  { %361 = vsyncpa [#allocation3], 1 }
 0x2c2   :  { %362 = vsyncpa [#allocation6], 1 }
 0x2c3   :  { %363 = vsyncpa [#allocation9], 1 }
 0x2c4   :  { %364 = vsyncpa [#allocation4], 1 }

</bundles_post_ra>
